<compile_context>
chip_gen: v7x
topology: tpu7x:2x2x1
jax: 0.10.0
libtpu: 0.0.40
codegen_flags: <defaults>
</compile_context>

<pallas_src>
import jax
import jax.numpy as jnp
from jax.experimental import pallas as pl
from jax.experimental.pallas import tpu as pltpu

IN_FEATURES = 784
HIDDEN = 100
OUT_FEATURES = 10

# Lane-aligned (multiple of 128) padded feature widths.
HIDDEN_P = 128
OUT_P = 128

MIN_GRID_STEPS = 4   # >=2 engages double-buffering; >=4 shards across v7x's 2 TCs
MAX_TB = 2048        # 2 bufs x TB x (784+128) x 4B ~= 15 MB of pipelined buffers


def _round_up(x: int, m: int) -> int:
    return (x + m - 1) // m * m


def _pick_batch_tile(B: int) -> int:
    if B <= 8:
        # Single block whose sublane dim equals the full array dim (allowed by the
        # (8,128) rule); no padding, no ragged tile for tiny batches.
        return B
    return min(MAX_TB, _round_up(pl.cdiv(B, MIN_GRID_STEPS), 8))


def mnist_kernel(x_ref, w1_ref, b1_ref, w2_ref, b2_ref, o_ref):
    # x_ref : (TB, 784)  f32   (cast to bf16 here; the cast hides under DMA slack)
    # w1_ref: (784, 128) bf16     b1_ref: (1, 128) f32
    # w2_ref: (128, 128) bf16     b2_ref: (1, 128) f32 (-1e30 on padded lanes)
    # o_ref : (TB, 128)  f32      (only the first 10 lanes are meaningful)
    x = x_ref[...].astype(jnp.bfloat16)

    # Layer 1: Linear + ReLU. bf16 MXU matmul with f32 accumulation; bias add and
    # ReLU on the VPU in f32 (v5e's VPU has no bf16 path).
    h = jnp.dot(x, w1_ref[...], preferred_element_type=jnp.float32) + b1_ref[...]
    h = jnp.maximum(h, 0.0)

    # Layer 2: Linear with aligned K=128. Padded hidden lanes are exactly zero
    # (w1 columns / b1 zero-padded), so padded K-rows of w2 contribute nothing.
    # Padded output lanes get logits == b2 == -1e30, which removes them from the
    # max / logsumexp below (mask folded into the bias; no iota/select needed).
    logits = (
        jnp.dot(h.astype(jnp.bfloat16), w2_ref[...], preferred_element_type=jnp.float32)
        + b2_ref[...]
    )

    # LogSoftmax over the 10 real classes.
    m = jnp.max(logits, axis=-1, keepdims=True)
    shifted = logits - m
    lse = jnp.log(jnp.sum(jnp.exp(shifted), axis=-1, keepdims=True))
    o_ref[...] = (shifted - lse).astype(o_ref.dtype)


@jax.jit
def mnist_forward(x_nchw, w1, b1, w2, b2):
    # nn.Flatten(): (B, 1, 28, 28) -> (B, 784)   (glue, plain JAX). Kept f32.
    B = x_nchw.shape[0]
    x = x_nchw.reshape(B, -1).astype(jnp.float32)

    # Weights: zero-pad features to 128 lanes; bf16 MXU operands, f32 biases.
    w1_p = jnp.pad(w1, ((0, 0), (0, HIDDEN_P - HIDDEN))).astype(jnp.bfloat16)
    b1_p = jnp.pad(b1, ((0, 0), (0, HIDDEN_P - HIDDEN))).astype(jnp.float32)
    w2_p = jnp.pad(
        w2, ((0, HIDDEN_P - HIDDEN), (0, OUT_P - OUT_FEATURES))
    ).astype(jnp.bfloat16)
    # Fold the padded-lane mask into b2: padded w2 columns are zero, so padded
    # logits equal this bias exactly; -1e30 keeps them out of max / logsumexp.
    b2_p = jnp.concatenate(
        [b2.astype(jnp.float32),
         jnp.full((1, OUT_P - OUT_FEATURES), -1e30, jnp.float32)],
        axis=1,
    )

    TB = _pick_batch_tile(B)
    grid = (pl.cdiv(B, TB),)   # ragged last tile handled by Pallas (no batch pad)

    weight_bytes = (
        IN_FEATURES * HIDDEN_P * 2 + HIDDEN_P * OUT_P * 2 + (HIDDEN_P + OUT_P) * 4
    )
    cost = pl.CostEstimate(
        flops=2 * B * (IN_FEATURES * HIDDEN_P + HIDDEN_P * OUT_P),
        transcendentals=B * (OUT_P + 1),
        bytes_accessed=B * IN_FEATURES * 4 + B * OUT_P * 4 + weight_bytes,
    )

    out = pl.pallas_call(
        mnist_kernel,
        out_shape=jax.ShapeDtypeStruct((B, OUT_P), jnp.float32),
        grid=grid,
        in_specs=[
            pl.BlockSpec((TB, IN_FEATURES), lambda i: (i, 0)),        # x: streamed per tile
            pl.BlockSpec((IN_FEATURES, HIDDEN_P), lambda i: (0, 0)),  # weights stay VMEM-resident
            pl.BlockSpec((1, HIDDEN_P), lambda i: (0, 0)),
            pl.BlockSpec((HIDDEN_P, OUT_P), lambda i: (0, 0)),
            pl.BlockSpec((1, OUT_P), lambda i: (0, 0)),
        ],
        out_specs=pl.BlockSpec((TB, OUT_P), lambda i: (i, 0)),
        compiler_params=pltpu.CompilerParams(
            dimension_semantics=("parallel",),   # batch tiles shard across TCs on v7x
            vmem_limit_bytes=32 << 20,           # explicit: v5e scoped default is 16 MiB
        ),
        cost_estimate=cost,
    )(x, w1_p, b1_p, w2_p, b2_p)

    # TODO(synk): for a fused downstream consumer (argmax / NLL gather) the
    # (B, 128) f32 writeback could shrink further; kept f32 full log-probs to
    # match the module's output semantics.
    return out[:, :OUT_FEATURES]


def init_params(key):
    # Deterministic synthetic parameters matching the module's layer shapes.
    k1, k2, k3, k4 = jax.random.split(key, 4)
    w1 = jax.random.normal(k1, (IN_FEATURES, HIDDEN), jnp.float32) * 0.05
    b1 = jax.random.normal(k2, (1, HIDDEN), jnp.float32) * 0.05
    w2 = jax.random.normal(k3, (HIDDEN, OUT_FEATURES), jnp.float32) * 0.05
    b2 = jax.random.normal(k4, (1, OUT_FEATURES), jnp.float32) * 0.05
    return w1, b1, w2, b2


def _reference_bf16(x_flat, w1, b1, w2, b2):
    # Reference using the same bf16 matmul-input numerics as the kernel.
    h = jnp.maximum(
        jnp.dot(x_flat.astype(jnp.bfloat16), w1.astype(jnp.bfloat16),
                preferred_element_type=jnp.float32) + b1, 0.0)
    logits = jnp.dot(h.astype(jnp.bfloat16), w2.astype(jnp.bfloat16),
                     preferred_element_type=jnp.float32) + b2
    return jax.nn.log_softmax(logits, axis=1)


def _reference_f32(x_flat, w1, b1, w2, b2):
    # Pure-f32 module semantics.
    h = jnp.maximum(x_flat @ w1 + b1, 0.0)
    return jax.nn.log_softmax(h @ w2 + b2, axis=1)


if __name__ == "__main__":
    key = jax.random.PRNGKey(0)
    kx, kx2, kp = jax.random.split(key, 3)
    w1, b1, w2, b2 = init_params(kp)

    # Small MNIST-shaped batch: (B=2, C=1, H=28, W=28) -> single full-array block.
    x_small = jax.random.normal(kx, (2, 1, 28, 28), jnp.float32)
    out_small = mnist_forward(x_small, w1, b1, w2, b2)
    jax.block_until_ready(out_small)

    # Larger batch exercising the multi-step pipelined / megacore-sharded path
    # (B=64 -> TB=16, grid=4).
    x_big = jax.random.normal(kx2, (64, 1, 28, 28), jnp.float32)
    out_big = mnist_forward(x_big, w1, b1, w2, b2)
    jax.block_until_ready(out_big)

    for x_in, out in ((x_small, out_small), (x_big, out_big)):
        x_flat = x_in.reshape(x_in.shape[0], -1)
        # Tight check vs the bf16-matmul-input reference.
        ref_bf = _reference_bf16(x_flat, w1, b1, w2, b2)
        assert jnp.allclose(out, ref_bf, atol=2e-3, rtol=2e-3), "mismatch vs bf16 reference"
        # Loose check vs pure-f32 module semantics (bf16 matmul-input rounding only).
        ref_f32 = _reference_f32(x_flat, w1, b1, w2, b2)
        assert jnp.allclose(out, ref_f32, atol=5e-2, rtol=5e-2), "mismatch vs f32 reference"

    print("KERNEL_OK")
</pallas_src>

<mosaic_0001>
module attributes {stable_mosaic.version = 11 : i64} {
  func.func @mnist_kernel(%arg0: i32, %arg1: memref<2x784xf32, #tpu.memory_space<vmem>>, %arg2: memref<784x128xbf16, #tpu.memory_space<vmem>>, %arg3: memref<1x128xf32, #tpu.memory_space<vmem>>, %arg4: memref<128x128xbf16, #tpu.memory_space<vmem>>, %arg5: memref<1x128xf32, #tpu.memory_space<vmem>>, %arg6: memref<2x128xf32, #tpu.memory_space<vmem>>) attributes {dimension_semantics = [#tpu.dimension_semantics<parallel>], iteration_bounds = array<i64: 1>, scalar_prefetch = 0 : i64, scratch_operands = 0 : i64, tpu.core_type = #tpu.core_type<tc>, window_params = [{transform_indices = @transform_0, window_bounds = array<i64: 2, 784>}, {pipeline_mode = #tpu.pipeline_mode<synchronous>, transform_indices = @transform_1, window_bounds = array<i64: 784, 128>}, {pipeline_mode = #tpu.pipeline_mode<synchronous>, transform_indices = @transform_2, window_bounds = array<i64: 1, 128>}, {pipeline_mode = #tpu.pipeline_mode<synchronous>, transform_indices = @transform_3, window_bounds = array<i64: 128, 128>}, {pipeline_mode = #tpu.pipeline_mode<synchronous>, transform_indices = @transform_4, window_bounds = array<i64: 1, 128>}, {transform_indices = @transform_5, window_bounds = array<i64: 2, 128>}]} {
    %c0 = arith.constant 0 : index
    %c0_0 = arith.constant 0 : index
    %0 = vector.load %arg1[%c0, %c0_0] : memref<2x784xf32, #tpu.memory_space<vmem>>, vector<2x784xf32>
    %1 = arith.truncf %0 : vector<2x784xf32> to vector<2x784xbf16>
    %c0_1 = arith.constant 0 : index
    %c0_2 = arith.constant 0 : index
    %2 = vector.load %arg2[%c0_1, %c0_2] : memref<784x128xbf16, #tpu.memory_space<vmem>>, vector<784x128xbf16>
    %cst = arith.constant dense<0.000000e+00> : vector<2x128xf32>
    %3 = tpu.matmul %1, %2, %cst {dimension_numbers = #tpu.dot_dimension_numbers<[1], [0], [0], [1], [0, 0, 1, 1], [], []>} : vector<2x784xbf16>, vector<784x128xbf16>, vector<2x128xf32> -> vector<2x128xf32>
    %c0_3 = arith.constant 0 : index
    %c0_4 = arith.constant 0 : index
    %4 = vector.load %arg3[%c0_3, %c0_4] : memref<1x128xf32, #tpu.memory_space<vmem>>, vector<1x128xf32>
    %5 = vector.broadcast %4 : vector<1x128xf32> to vector<2x128xf32>
    %6 = arith.addf %3, %5 : vector<2x128xf32>
    %cst_5 = arith.constant 0.000000e+00 : f32
    %7 = vector.broadcast %cst_5 : f32 to vector<2x128xf32>
    %8 = arith.maximumf %6, %7 : vector<2x128xf32>
    %9 = arith.truncf %8 : vector<2x128xf32> to vector<2x128xbf16>
    %c0_6 = arith.constant 0 : index
    %c0_7 = arith.constant 0 : index
    %10 = vector.load %arg4[%c0_6, %c0_7] : memref<128x128xbf16, #tpu.memory_space<vmem>>, vector<128x128xbf16>
    %cst_8 = arith.constant dense<0.000000e+00> : vector<2x128xf32>
    %11 = tpu.matmul %9, %10, %cst_8 {dimension_numbers = #tpu.dot_dimension_numbers<[1], [0], [0], [1], [0, 0, 1, 1], [], []>} : vector<2x128xbf16>, vector<128x128xbf16>, vector<2x128xf32> -> vector<2x128xf32>
    %c0_9 = arith.constant 0 : index
    %c0_10 = arith.constant 0 : index
    %12 = vector.load %arg5[%c0_9, %c0_10] : memref<1x128xf32, #tpu.memory_space<vmem>>, vector<1x128xf32>
    %13 = vector.broadcast %12 : vector<1x128xf32> to vector<2x128xf32>
    %14 = arith.addf %11, %13 : vector<2x128xf32>
    %cst_11 = arith.constant dense<0xFF800000> : vector<2xf32>
    %15 = vector.multi_reduction <maximumf>, %14, %cst_11 [1] : vector<2x128xf32> to vector<2xf32>
    %16 = vector.shape_cast %15 : vector<2xf32> to vector<2x1xf32>
    %17 = vector.broadcast %16 : vector<2x1xf32> to vector<2x128xf32>
    %18 = arith.subf %14, %17 : vector<2x128xf32>
    %19 = math.exp %18 : vector<2x128xf32>
    %cst_12 = arith.constant dense<0.000000e+00> : vector<2xf32>
    %20 = vector.multi_reduction <add>, %19, %cst_12 [1] : vector<2x128xf32> to vector<2xf32>
    %21 = vector.shape_cast %20 : vector<2xf32> to vector<2x1xf32>
    %22 = math.log %21 : vector<2x1xf32>
    %23 = vector.broadcast %22 : vector<2x1xf32> to vector<2x128xf32>
    %24 = arith.subf %18, %23 : vector<2x128xf32>
    %c0_13 = arith.constant 0 : index
    %c0_14 = arith.constant 0 : index
    %25 = vector.load %arg6[%c0_13, %c0_14] : memref<2x128xf32, #tpu.memory_space<vmem>>, vector<2x128xf32>
    tpu.vector_store %arg6[%c0_13, %c0_14], %24 {strides = array<i32>} : memref<2x128xf32, #tpu.memory_space<vmem>>, vector<2x128xf32>,
    return
  }
  func.func @transform_0(%arg0: i32) -> (i32, i32) {
    %c0_i32 = arith.constant 0 : i32
    %c0_i32_0 = arith.constant 0 : i32
    return %arg0, %c0_i32 : i32, i32
  }
  func.func @transform_1(%arg0: i32) -> (i32, i32) {
    %c0_i32 = arith.constant 0 : i32
    %c0_i32_0 = arith.constant 0 : i32
    %c0_i32_1 = arith.constant 0 : i32
    return %c0_i32, %c0_i32_0 : i32, i32
  }
  func.func @transform_2(%arg0: i32) -> (i32, i32) {
    %c0_i32 = arith.constant 0 : i32
    %c0_i32_0 = arith.constant 0 : i32
    %c0_i32_1 = arith.constant 0 : i32
    return %c0_i32, %c0_i32_0 : i32, i32
  }
  func.func @transform_3(%arg0: i32) -> (i32, i32) {
    %c0_i32 = arith.constant 0 : i32
    %c0_i32_0 = arith.constant 0 : i32
    %c0_i32_1 = arith.constant 0 : i32
    return %c0_i32, %c0_i32_0 : i32, i32
  }
  func.func @transform_4(%arg0: i32) -> (i32, i32) {
    %c0_i32 = arith.constant 0 : i32
    %c0_i32_0 = arith.constant 0 : i32
    %c0_i32_1 = arith.constant 0 : i32
    return %c0_i32, %c0_i32_0 : i32, i32
  }
  func.func @transform_5(%arg0: i32) -> (i32, i32) {
    %c0_i32 = arith.constant 0 : i32
    %c0_i32_0 = arith.constant 0 : i32
    return %arg0, %c0_i32 : i32, i32
  }
}

</mosaic_0001>

<bundles_post_ra>
// kernel: mnist_forward.1
= control target key start
LH: loop header
LB: loop body
LE: loop exit
PB: predicated region body
PF: predicated region fallthrough
CT: control target
= control target key end

     0   :  { %v30_v27 = vlaneseq  ;;  %v1031_v35 = vmov 1983009808   ;;  %v1032_v40 = vmov 0.0   ;;  %vm1033_vm0 = vmmov 0   ;;  %s1274_s0 = inlined_call_operand.vmem [shape: f32[2,784], index: 0, kind: input, shape index: {}]   ;;  %s1275_s1 = inlined_call_operand.vmem [shape: bf16[784,128], index: 1, kind: input, shape index: {}]   ;;  %s1276_s2 = inlined_call_operand.vmem [shape: f32[1,128], index: 2, kind: input, shape index: {}]   ;;  %s1277_s3 = inlined_call_operand.vmem [shape: bf16[128,128], index: 3, kind: input, shape index: {}]   ;;  %s1278_s4 = inlined_call_operand.vmem [shape: f32[1,128], index: 4, kind: input, shape index: {}]   ;;  %s1279_s5 = inlined_call_operand.hbm [shape: f32[2,128], index: 5, kind: output, shape index: {}]  }
   0x1   :  { %v944_v0 = vld [vmem:[%s1275_s1 + $0x40] sm:$0xff]   ;;  %v948_v4 = vld [vmem:[%s1275_s1 + $0x48] sm:$0xff]   ;;  %v952_v8 = vld [vmem:[%s1275_s1 + $0x50] sm:$0xff]   ;;  %v28_v36 = vunpack.c.l.s4 %v1031_v35  ;;  %vm472_vm1 = vcmask 130048  }
   0x2   :  { %v945_v1 = vld [vmem:[%s1275_s1] sm:$0xff]   ;;  %837 = vmatprep.subr.bf16.mxu0 %v944_v0  ;;  %v949_v5 = vld [vmem:[%s1275_s1 + $0x8] sm:$0xff]   ;;  %v953_v9 = vld [vmem:[%s1275_s1 + $0x10] sm:$0xff]   ;;  %v31_v32 = vshrl.u32 %v30_v27, 7 }
   0x3   :  { %v946_v2 = vld [vmem:[%s1275_s1 + $0xc0] sm:$0xff]   ;;  %838 = vmatpush3.bf16.msra.mxu0 %v945_v1  ;;  %v950_v6 = vld [vmem:[%s1275_s1 + $0xc8] sm:$0xff]   ;;  %v954_v10 = vld [vmem:[%s1275_s1 + $0xd0] sm:$0xff]   ;;  %v29_v38 = vunpack.c.0.s8 %v28_v36 }
   0x4   :  { %v947_v3 = vld [vmem:[%s1275_s1 + $0x80] sm:$0xff]   ;;  %859 = vmatprep.subr.bf16.mxu1 %v946_v2  ;;  %839 = vmatprep.subr.bf16.mxu0 %v948_v4  ;;  %v951_v7 = vld [vmem:[%s1275_s1 + $0x88] sm:$0xff]   ;;  %v955_v11 = vld [vmem:[%s1275_s1 + $0x90] sm:$0xff]  }
   0x5   :  { %860 = vmatpush3.bf16.msra.mxu1 %v947_v3  ;;  %v956_v12 = vld [vmem:[%s1275_s1 + $0x58] sm:$0xff]   ;;  %v960_v16 = vld [vmem:[%s1275_s1 + $0x60] sm:$0xff]   ;;  %v964_v20 = vld [vmem:[%s1275_s1 + $0x68] sm:$0xff]   ;;  %v32_v41 = vsub.s32 %v29_v38, %v31_v32 }
   0x6   :  { %861 = vmatprep.subr.bf16.mxu1 %v950_v6  ;;  %v957_v13 = vld [vmem:[%s1275_s1 + $0x18] sm:$0xff]   ;;  %v961_v17 = vld [vmem:[%s1275_s1 + $0x20] sm:$0xff]   ;;  %v965_v21 = vld [vmem:[%s1275_s1 + $0x28] sm:$0xff]  }
   0x7   :  { %840 = vmatpush3.bf16.msra.mxu0 %v949_v5  ;;  %v958_v14 = vld [vmem:[%s1275_s1 + $0xd8] sm:$0xff]   ;;  %v962_v18 = vld [vmem:[%s1275_s1 + $0xe0] sm:$0xff]   ;;  %v966_v22 = vld [vmem:[%s1275_s1 + $0xe8] sm:$0xff]  }
   0x8   :  { %841 = vmatprep.subr.bf16.mxu0 %v952_v8  ;;  %v959_v15 = vld [vmem:[%s1275_s1 + $0x98] sm:$0xff]   ;;  %v963_v19 = vld [vmem:[%s1275_s1 + $0xa0] sm:$0xff]   ;;  %v967_v23 = vld [vmem:[%s1275_s1 + $0xa8] sm:$0xff]  }
   0x9   :  { %862 = vmatpush3.bf16.msra.mxu1 %v951_v7  ;;  %v968_v24 = vld [vmem:[%s1275_s1 + $0x70] sm:$0xff]   ;;  %v972_v29 = vld [vmem:[%s1275_s1 + $0x78] sm:$0xff]   ;;  %v22_v33 = vld [vmem:[%s1274_s0] sm:$0xff] }
   0xa   :  { %863 = vmatprep.subr.bf16.mxu1 %v954_v10  ;;  %v969_v25 = vld [vmem:[%s1275_s1 + $0x30] sm:$0xff]   ;;  %v973_v30 = vld [vmem:[%s1275_s1 + $0x38] sm:$0xff]   ;;  %v976_v37 = vld [vmem:[%s1275_s1 + $0x140] sm:$0xff]   ;;  %v26_v39 = vcombine.high %v22_v33, %v22_v33  ;;  %v33_v42 = vrot.slane %v22_v33, %v32_v41 }
   0xb   :  { %842 = vmatpush3.bf16.msra.mxu0 %v953_v9  ;;  %v970_v26 = vld [vmem:[%s1275_s1 + $0xf0] sm:$0xff]   ;;  %v974_v31 = vld [vmem:[%s1275_s1 + $0xf8] sm:$0xff]   ;;  %v978_v50 = vld [vmem:[%s1275_s1 + $0x100] sm:$0xff]  }
   0xc   :  { %843 = vmatprep.subr.bf16.mxu0 %v956_v12  ;;  %v971_v28 = vld [vmem:[%s1275_s1 + $0xb0] sm:$0xff]   ;;  %v975_v34 = vld [vmem:[%s1275_s1 + $0xb8] sm:$0xff]   ;;  %v40_v43 = vrot.slane %v26_v39, %v32_v41  ;;  %v41_v44 = vcombine.high %v33_v42, %v33_v42  ;;  %v66_v46 = vpack.c.bf16 %v33_v42, %v33_v42  ;;  %v979_v51 = vld [vmem:[%s1275_s1 + $0x148] sm:$0xff]  }
   0xd   :  { %864 = vmatpush3.bf16.msra.mxu1 %v955_v11  ;;  %v980_v52 = vld [vmem:[%s1275_s1 + $0x108] sm:$0xff]   ;;  %v981_v53 = vld [vmem:[%s1275_s1 + $0x150] sm:$0xff]   ;;  %v983_v55 = vld [vmem:[%s1275_s1 + $0x158] sm:$0xff]  }
   0xe   :  { %865 = vmatprep.subr.bf16.mxu1 %v958_v14  ;;  %v42_v45 = vcombine.high %v40_v43, %v40_v43  ;;  %v68_v47 = vpack.c.bf16 %v40_v43, %v40_v43  ;;  %v67_v48 = vpack.c.bf16 %v41_v44, %v41_v44  ;;  %v982_v54 = vld [vmem:[%s1275_s1 + $0x110] sm:$0xff]   ;;  %v993_v56 = vld [vmem:[%s1275_s1 + $0x180] sm:$0xff]   ;;  %v23_v57 = vld [vmem:[%s1274_s0 + $0x8] sm:$0x3f] }
   0xf   :  { %844 = vmatpush3.bf16.msra.mxu0 %v957_v13  ;;  %v43_v58 = vcombine.high %v23_v57, %v23_v57  ;;  %v50_v59 = vrot.slane %v23_v57, %v32_v41  ;;  %v984_v60 = vld [vmem:[%s1275_s1 + $0x118] sm:$0xff]   ;;  %v985_v1 = vld [vmem:[%s1275_s1 + $0x160] sm:$0xff]  }
  0x10   :  { %845 = vmatprep.subr.bf16.mxu0 %v960_v16  ;;  %v69_v49 = vpack.c.bf16 %v42_v45, %v42_v45  ;;  %508 = vmatprep.mubr.bf16.mxu0 %v67_v48 }
  0x11   :  { %866 = vmatpush3.bf16.msra.mxu1 %v959_v15  ;;  %v57_v61 = vrot.slane %v43_v58, %v32_v41  ;;  %v58_v62 = vcombine.high %v50_v59, %v50_v59 }
  0x12   :  { %867 = vmatprep.subr.bf16.mxu1 %v962_v18  ;;  %548 = vmatprep.mubr.bf16.mxu1 %v69_v49 }
  0x13   :  { %846 = vmatpush3.bf16.msra.mxu0 %v961_v17  ;;  %v71_v63 = vpack.c.bf16 %v58_v62, %v58_v62  ;;  %v72_v0 = vpack.c.bf16 %v57_v61, %v57_v61 }
  0x14   :  { %847 = vmatprep.subr.bf16.mxu0 %v964_v20 }
  0x15   :  { %868 = vmatpush3.bf16.msra.mxu1 %v963_v19 }
  0x16   :  { %869 = vmatprep.subr.bf16.mxu1 %v966_v22 }
  0x17   :  { %848 = vmatpush3.bf16.msra.mxu0 %v965_v21 }
  0x18   :  { %849 = vmatprep.subr.bf16.mxu0 %v968_v24 }
  0x19   :  { %870 = vmatpush3.bf16.msra.mxu1 %v967_v23 }
  0x1a   :  { %871 = vmatprep.subr.bf16.mxu1 %v970_v26 }
  0x1b   :  { %850 = vmatpush3.bf16.msra.mxu0 %v969_v25 }
  0x1c   :  { %851 = vmatprep.subr.bf16.mxu0 %v972_v29 }
  0x1d   :  { %872 = vmatpush3.bf16.msra.mxu1 %v971_v28 }
  0x1e   :  { %873 = vmatprep.subr.bf16.mxu1 %v974_v31 }
  0x1f   :  { %852 = vmatpush3.bf16.msra.mxu0 %v973_v30 }
  0x20   :  { %881 = vmatprep.subr.bf16.mxu0 %v976_v37 }
  0x21   :  { %874 = vmatpush3.bf16.msra.mxu1 %v975_v34 }
  0x22   :  { %914 = vmatprep.subr.bf16.mxu1 %v1032_v40  ;;  %509 = vmatmul.mubr.bf16.vlgmr.msra.gmra.mrb[0].mxu0 %v66_v46 }
  0x23   :  { %882 = vmatpush3.bf16.msra.mxu0 %v978_v50 }
  0x24   :  { %549 = vmatmul.mubr.bf16.vlgmr.msra.gmra.mrb[0].mxu1 %v68_v47  ;;  %883 = vmatprep.subr.bf16.mxu0 %v979_v51 }
  0x25   :  { %916 = vmatprep.mubr.msk.bf16.mxu1 %vm1033_vm0, %v1032_v40  ;;  %915 = vmatpush3.bf16.msra.mxu1 %v993_v56 }
  0x26   :  { %920 = vmatprep.subr.bf16.mxu1 %v1032_v40 }
  0x27   :  { %884 = vmatpush3.bf16.msra.mxu0 %v980_v52 }
  0x28   :  { %885 = vmatprep.subr.bf16.mxu0 %v981_v53 }
  0x2b   :  { %886 = vmatpush3.bf16.msra.mxu0 %v982_v54 }
  0x2c   :  { %887 = vmatprep.subr.bf16.mxu0 %v983_v55 }
  0x2d   :  { %10 = vsyncpa [#allocation3], 0  ;;  %588 = vmatprep.mubr.bf16.mxu0 %v71_v63  ;;  %917 = vmatmul.mubr.msk.bf16.vlgmr.msra.gmra.mrb[4].mxu1 %vm472_vm1, %v72_v0  ;;  %v986_v2 = vld [vmem:[%s1275_s1 + $0x120] sm:$0xff]   ;;  %v987_v3 = vld [vmem:[%s1275_s1 + $0x168] sm:$0xff]   ;;  %v70_v9 = vpack.c.bf16 %v50_v59, %v50_v59  ;;  %vm749_vm2 = vcmask 1041408   ;;  %s1034_s10 = smov [#allocation2]  }
  0x2e   :  { %936 = vmatprep.mubr.msk.bf16.mxu1 %vm1033_vm0, %v1032_v40  ;;  %v988_v4 = vld [vmem:[%s1275_s1 + $0x128] sm:$0xff]   ;;  %v989_v5 = vld [vmem:[%s1275_s1 + $0x170] sm:$0xff]   ;;  %v991_v7 = vld [vmem:[%s1275_s1 + $0x178] sm:$0xff]  }
  0x2f   :  { %888 = vmatpush3.bf16.msra.mxu0 %v984_v60  ;;  %v990_v6 = vld [vmem:[%s1275_s1 + $0x130] sm:$0xff]   ;;  %v992_v8 = vld [vmem:[%s1275_s1 + $0x138] sm:$0xff]   ;;  %v995_v10 = vld [vmem:[%s1277_s3] sm:$0xff]  }
  0x30   :  { %889 = vmatprep.subr.bf16.mxu0 %v985_v1  ;;  %921 = vmatpush3.bf16.msra.mxu1 %v995_v10  ;;  %v996_v11 = vld [vmem:[%s1277_s3 + $0x8] sm:$0xff]   ;;  %v997_v12 = vld [vmem:[%s1277_s3 + $0x10] sm:$0xff]   ;;  %v998_v13 = vld [vmem:[%s1277_s3 + $0x18] sm:$0xff]  }
  0x31   :  { %922 = vmatprep.subr.bf16.mxu1 %v1032_v40  ;;  %v999_v14 = vld [vmem:[%s1277_s3 + $0x20] sm:$0xff]   ;;  %v1000_v15 = vld [vmem:[%s1277_s3 + $0x28] sm:$0xff]   ;;  %v1001_v16 = vld [vmem:[%s1277_s3 + $0x30] sm:$0xff]  }
  0x32   :  { %v1002_v17 = vld [vmem:[%s1277_s3 + $0x38] sm:$0xff]   ;;  %v777_v20 = vld [vmem:[%s1276_s2] ss:$0 sm:$0xff] }
  0x33   :  { %890 = vmatpush3.bf16.msra.mxu0 %v986_v2  ;;  %v828_v44 = vld [vmem:[%s1278_s4] ss:$0 sm:$0xff]  ;;  %s769_s4 = sshll.u32 %s1034_s10, 4  ;;  %s770_s4 = int_to_ptr.vmem [resolvable:$true] %s769_s4 }
  0x34   :  { %891 = vmatprep.subr.bf16.mxu0 %v987_v3  ;;  %923 = vmatpush3.bf16.msra.mxu1 %v996_v11  ;;  %s1007_s11 = scalar_lea.vmem %s770_s4, 32  ;;  %p1012_p1 = scmp.lt.s32.totalorder %s770_s4, %s770_s4 }
  0x35   :  { %924 = vmatprep.subr.bf16.mxu1 %v1032_v40  ;;  %p1008_p0 = scmp.ne.s32.totalorder %s770_s4, %s1007_s11  ;;  %p1013_p2 = scmp.lt.s32.totalorder %s1007_s11, %s1007_s11 }
  0x37   :  { %892 = vmatpush3.bf16.msra.mxu0 %v988_v4  ;;  %p1014_p3 = por %p1013_p2, %p1012_p1 }
  0x38   :  { %893 = vmatprep.subr.bf16.mxu0 %v989_v5  ;;  %925 = vmatpush3.bf16.msra.mxu1 %v997_v12 }
  0x39   :  { %926 = vmatprep.subr.bf16.mxu1 %v1032_v40  ;;  %p1015_p4 = pnand %p1014_p3, %p1008_p0 }
  0x3b   :  { %894 = vmatpush3.bf16.msra.mxu0 %v990_v6 }
  0x3c   :  { %895 = vmatprep.subr.bf16.mxu0 %v991_v7  ;;  %927 = vmatpush3.bf16.msra.mxu1 %v998_v13 }
  0x3d   :  { %928 = vmatprep.subr.bf16.mxu1 %v1032_v40 }
  0x3f   :  { %896 = vmatpush3.bf16.msra.mxu0 %v992_v8 }
  0x40   :  { %929 = vmatpush3.bf16.msra.mxu1 %v999_v14 }
  0x41   :  { %930 = vmatprep.subr.bf16.mxu1 %v1032_v40 }
  0x42   :  { %589 = vmatmul.mubr.bf16.vlgmr.msra.gmra.mrb[4].mxu0 %v70_v9 }
  0x44   :  { %931 = vmatpush3.bf16.msra.mxu1 %v1000_v15 }
  0x45   :  { %932 = vmatprep.subr.bf16.mxu1 %v1032_v40 }
  0x48   :  { %933 = vmatpush3.bf16.msra.mxu1 %v1001_v16 }
  0x49   :  { %934 = vmatprep.subr.bf16.mxu1 %v1032_v40 }
  0x4c   :  { %935 = vmatpush3.bf16.msra.mxu1 %v1002_v17 }
  0xf5   :  { %v853_v18 = vpop.f32.mrb[0].mxu0 }
  0xf6   :  { %v854_v21 = vpop.f32.mrb[1].mxu0 }
  0xf7   :  { %v875_v19 = vpop.f32.mrb[0].mxu1  ;;  %v855_v23 = vadd.f32 %v854_v21, %v853_v18  ;;  %v856_v24 = vpop.f32.mrb[2].mxu0 }
  0xf8   :  { %v876_v22 = vpop.f32.mrb[1].mxu1  ;;  %v857_v27 = vpop.f32.mrb[3].mxu0 }
  0xf9   :  { %v877_v25 = vadd.f32 %v876_v22, %v875_v19  ;;  %v878_v26 = vpop.f32.mrb[2].mxu1  ;;  %v511_v29 = vadd.f32 %v855_v23, %v777_v20 }
  0xfa   :  { %v879_v28 = vpop.f32.mrb[3].mxu1 }
  0xfb   :  { %v551_v30 = vadd.f32 %v877_v25, %v511_v29 }
 0x100   :  { %v630_v31 = vpop.f32.mrb[4].mxu1 }
 0x101   :  { %v918_v32 = vpop.f32.mrb[5].mxu1 }
 0x102   :  { %v633_v33 = vpop.f32.mrb[6].mxu1 }
 0x103   :  { %v919_v34 = vpop.f32.mrb[7].mxu1 }
 0x115   :  { %v897_v35 = vpop.f32.mrb[4].mxu0 }
 0x116   :  { %v898_v36 = vpop.f32.mrb[5].mxu0 }
 0x117   :  { %v899_v37 = vadd.f32 %v898_v36, %v897_v35  ;;  %v900_v38 = vpop.f32.mrb[6].mxu0 }
 0x118   :  { %v901_v39 = vpop.f32.mrb[7].mxu0 }
 0x119   :  { %v591_v40 = vadd.f32 %v899_v37, %v551_v30 }
 0x11b   :  { %v631_v41 = vadd.f32 %v630_v31, %v591_v40 }
 0x11d   :  { %v636_v42 = vmax.f32 %v631_v41, 0.0 }
 0x11f   :  { %v637_v43 = vpack.c.bf16 %v636_v42, %v636_v42 }
 0x121   :  { %937 = vmatmul.mubr.bf16.vlgmr.msra.gmra.mrb[8].mxu1 %v637_v43 }
 0x1f4   :  { %v743_v45 = vpop.f32.mrb[8].mxu1 }
 0x1f5   :  { %v744_v46 = vadd.f32 %v828_v44, %v743_v45  ;;  %v938_v47 = vpop.f32.mrb[9].mxu1 }
 0x1f6   :  { %v746_v48 = vpop.f32.mrb[10].mxu1 }
 0x1f7   :  { %v939_v49 = vpop.f32.mrb[11].mxu1  ;;  %v750_v50 = vsel %vm749_vm2, %v744_v46, -inf }
 0x1f8   :  { %751 = vmax.xlane.f32.xlu0 %v750_v50 }
 0x285   :  { %v752_v51 = vpop.xlane.xlu0 %751 }
 0x286   :  { %v753_v52 = vsub.f32 %v744_v46, %v752_v51 }
 0x288   :  { %v754_v53 = vmul.f32 1.442695, %v753_v52 }
 0x28a   :  { %1003 = vpow2.f32 %v754_v53 }
 0x294   :  { %v1004_v54 = vpop.eup %1003 }
 0x295   :  { %v756_v55 = vsel %vm749_vm2, %v1004_v54, 0.0 }
 0x296   :  { %757 = vadd.xlane.f32.xlu0 %v756_v55 }
 0x323   :  { %v758_v56 = vpop.xlane.xlu0 %757 }
 0x324   :  { %1005 = vlog2.f32 %v758_v56 }
 0x32e   :  { %v1006_v57 = vpop.eup %1005 }
 0x32f   :  { %v760_v58 = vmul.f32 0.6931472, %v1006_v57 }
 0x331   :  { %v761_v59 = vsub.f32 %v753_v52, %v760_v58 }
 0x333   :  { %762 = vst [vmem:[#allocation2] sm:$0x3] %v761_v59 }
 0x334   :  { %1018 = shalt.err (!%p1015_p4)
}
 0x335   :  { %s1019_s14 = scalar_lea.hbm %s1279_s5, 32 }
 0x336   :  { %p1020_p5 = scmp.ne.s32.totalorder %s1279_s5, %s1019_s14  ;;  %p1023_p6 = scmp.lt.u32.totalorder %s1019_s14, %s1279_s5 }
 0x338   :  { %p1025_p7 = pnand %p1023_p6, %p1020_p5 }
 0x33a   :  { %1028 = shalt.err (!%p1025_p7)
}
 0x33b   :  { %772 = dma.vmem_to_hbm [thread:$0]  %s770_s4, 32, %s1279_s5, [#allocation3]  }
 0x33c   :  { %1029 = dma.done.wait [#allocation3], 32  }
 0x33d   :  { %1030 = vsyncadd [#allocation3], 4294967264 }
 0x33e   :  { %776 = vsyncpa [#allocation3], 1 }

</bundles_post_ra>
